<compile_context>
chip_gen: v7x
topology: tpu7x:2x2x1
jax: 0.10.0
libtpu: 0.0.40
codegen_flags: <defaults>
</compile_context>

<pallas_src>
import jax
import jax.numpy as jnp
from jax.experimental import pallas as pl
from jax.experimental.pallas import tpu as pltpu


# ---------------------------------------------------------------------------
# Kernel
# ---------------------------------------------------------------------------
def _make_kernel(num_layers, compute_dtype=jnp.bfloat16):
    """Fused kernel: layer 1 as VPU broadcast-FMAs, layers 2+ as MXU matmuls."""

    def kernel(kpts_ref, scr_ref, *args):
        out_ref = args[-1]
        params = args[:-1]

        kx = kpts_ref[0, 0:1, :]          # (1, TN) f32
        ky = kpts_ref[0, 1:2, :]          # (1, TN) f32
        s = scr_ref[0]                    # (1, TN) f32

        # Layer 1 (C_in = 3): three broadcast FMAs on the VPU; a K=3 matmul
        # would use ~1-2% of the MXU contraction width.
        w1x = params[0][...]              # (C1, 1) f32, BN scale pre-folded
        w1y = params[1][...]
        w1s = params[2][...]
        b1 = params[3][...]               # (C1, 1) f32, bias + BN shift folded
        h = w1x * kx + w1y * ky + w1s * s + b1
        if num_layers > 1:
            h = jnp.maximum(h, 0.0)       # ReLU

        # Layers 2..L: 1x1 Conv1d == per-position matmul on the MXU.
        # Weights pre-cast to compute_dtype in the wrapper; f32 accumulation.
        for li in range(num_layers - 1):
            w = params[4 + 2 * li][...]   # (C_out, C_in) compute_dtype
            b = params[5 + 2 * li][...]   # (C_out, 1) f32
            h = jnp.dot(w, h.astype(compute_dtype),
                        preferred_element_type=jnp.float32) + b
            if li < num_layers - 2:
                h = jnp.maximum(h, 0.0)   # ReLU (not after the last layer)

        out_ref[0] = h.astype(out_ref.dtype)

    return kernel


# ---------------------------------------------------------------------------
# Parameter folding / tiling helpers
# ---------------------------------------------------------------------------
def _fold_params(params):
    """Fold eval-mode BN (scale, shift) and conv bias into per-layer (w, b)."""
    folded = []
    for p in params:
        if len(p) == 4:
            w, b, scale, shift = p
            folded.append((scale * w, scale * b + shift))
        else:
            w, b = p
            folded.append((w, b))
    return folded


def _round_up(x, m):
    return (x + m - 1) // m * m


def _choose_tile_n(N, B, tile_n_max):
    """Lane-dense tile: a multiple of 128 that divides round_up(N, 128), so the
    only ragged block is the <128-column alignment tail. Also guarantees >= 2
    total grid steps so both v7x TensorCores get work."""
    n_align = _round_up(N, 128)
    k = n_align // 128
    max_d = max(1, min(tile_n_max // 128, k))
    divisors = [d for d in range(1, k + 1) if k % d == 0 and d <= max_d]
    d = divisors[-1]
    if B * (k // d) < 2 and len(divisors) > 1:
        d = divisors[-2]
    return 128 * d


# ---------------------------------------------------------------------------
# Wrapper
# ---------------------------------------------------------------------------
def keypoint_encoder_forward(kpts, scores, params, *, tile_n_max=4096,
                             out_dtype=jnp.bfloat16,
                             compute_dtype=jnp.bfloat16):
    """kpts: [B, N, 2] f32, scores: [B, N] f32 -> [B, feature_dim, N] out_dtype."""
    B, N, _ = kpts.shape

    # Tiny layout glue (2 + 1 channels); no [B,3,N] concat is materialized.
    kpts_t = jnp.transpose(kpts, (0, 2, 1)).astype(jnp.float32)   # [B, 2, N]
    scores3 = scores.astype(jnp.float32)[:, None, :]              # [B, 1, N]

    tile_n = _choose_tile_n(N, B, tile_n_max)
    num_n = pl.cdiv(N, tile_n)

    folded = _fold_params(params)
    num_layers = len(folded)
    feature_dim = folded[-1][0].shape[0]
    channels = [3] + [w.shape[0] for (w, _b) in folded]

    # Flat param list: layer-1 weight split into per-input columns (VPU FMAs),
    # MXU-layer weights pre-cast to compute_dtype, biases kept f32.
    w1, b1 = folded[0]
    flat_params = [w1[:, 0:1], w1[:, 1:2], w1[:, 2:3], b1]
    for w, b in folded[1:]:
        flat_params.append(w.astype(compute_dtype))
        flat_params.append(b)

    data_map = lambda b, j: (b, 0, j)
    param_map = lambda b, j: (0, 0)     # tiny tensors: same full block every step
    in_specs = [pl.BlockSpec((1, 2, tile_n), data_map),
                pl.BlockSpec((1, 1, tile_n), data_map)]
    in_specs += [pl.BlockSpec(p.shape, param_map) for p in flat_params]

    out_shape = jax.ShapeDtypeStruct((B, feature_dim, N), out_dtype)
    out_spec = pl.BlockSpec((1, feature_dim, tile_n), data_map)

    flops = 2 * B * N * sum(channels[i] * channels[i + 1]
                            for i in range(num_layers))
    bytes_accessed = int(
        kpts_t.size * 4 + scores3.size * 4
        + B * feature_dim * N * jnp.dtype(out_dtype).itemsize
        + sum(int(p.size) * p.dtype.itemsize for p in flat_params))

    fn = pl.pallas_call(
        _make_kernel(num_layers, compute_dtype),
        out_shape=out_shape,
        grid_spec=pltpu.PrefetchScalarGridSpec(
            num_scalar_prefetch=0,
            grid=(B, num_n),
            in_specs=in_specs,
            out_specs=out_spec,
        ),
        compiler_params=pltpu.CompilerParams(
            dimension_semantics=("parallel", "parallel")),
        cost_estimate=pl.CostEstimate(
            flops=flops, transcendentals=0, bytes_accessed=bytes_accessed),
    )
    return fn(kpts_t, scores3, *flat_params)


# ---------------------------------------------------------------------------
# Parameter init + references
# ---------------------------------------------------------------------------
def init_params(key, feature_dim, layers, eps=1e-5):
    """Deterministic parameter init mirroring the PyTorch module shapes."""
    channels = [3] + list(layers) + [feature_dim]
    n = len(channels) - 1
    params = []
    for i in range(n):
        c_in, c_out = channels[i], channels[i + 1]
        key, k1, k2, k3, k4, k5, k6 = jax.random.split(key, 7)
        # Conv1d default init: U(-1/sqrt(fan_in), 1/sqrt(fan_in)), fan_in = c_in
        bound = 1.0 / float(c_in) ** 0.5
        w = jax.random.uniform(k1, (c_out, c_in), jnp.float32, -bound, bound)
        if i == n - 1:
            # nn.init.constant_(self.encoder[-1].bias, 0.0)
            b = jnp.zeros((c_out, 1), jnp.float32)
            params.append((w, b))
        else:
            b = jax.random.uniform(k2, (c_out, 1), jnp.float32, -bound, bound)
            gamma = jax.random.uniform(k3, (c_out, 1), jnp.float32, 0.5, 1.5)
            beta = jax.random.uniform(k4, (c_out, 1), jnp.float32, -0.5, 0.5)
            rmean = jax.random.uniform(k5, (c_out, 1), jnp.float32, -0.5, 0.5)
            rvar = jax.random.uniform(k6, (c_out, 1), jnp.float32, 0.5, 1.5)
            scale = gamma * jax.lax.rsqrt(rvar + eps)
            shift = beta - rmean * scale
            params.append((w, b, scale, shift))
    return params


def reference_exact(kpts, scores, params):
    """Pure-JAX f32 reference (unfolded BN), independent of the kernel's folding."""
    x = jnp.concatenate(
        [jnp.transpose(kpts, (0, 2, 1)), scores[:, None, :]], axis=1
    ).astype(jnp.float32)
    n = len(params)
    h = x
    for i, p in enumerate(params):
        w, b = p[0], p[1]
        h = jnp.einsum("oc,bcn->bon", w, h) + b[None, :, :]
        if i < n - 1:
            scale, shift = p[2], p[3]
            h = h * scale[None, :, :] + shift[None, :, :]
            h = jnp.maximum(h, 0.0)
    return h


def reference_matched(kpts, scores, params, compute_dtype=jnp.bfloat16):
    """Reference mirroring the kernel numerics: folded BN, f32 layer 1,
    compute_dtype MXU operands for layers 2+, f32 accumulation."""
    x = jnp.concatenate(
        [jnp.transpose(kpts, (0, 2, 1)), scores[:, None, :]], axis=1
    ).astype(jnp.float32)
    folded = _fold_params(params)
    n = len(folded)
    h = x
    for i, (w, b) in enumerate(folded):
        if i == 0:
            h = jnp.einsum("oc,bcn->bon", w, h) + b[None, :, :]
        else:
            h = jnp.einsum("oc,bcn->bon", w.astype(compute_dtype),
                           h.astype(compute_dtype),
                           preferred_element_type=jnp.float32) + b[None, :, :]
        if i < n - 1:
            h = jnp.maximum(h, 0.0)
    return h


# ---------------------------------------------------------------------------
# Self-test
# ---------------------------------------------------------------------------
if __name__ == "__main__":
    key = jax.random.PRNGKey(0)
    k_kpts, k_scores, k_params, k_kpts2, k_scores2 = jax.random.split(key, 5)

    feature_dim = 32
    layers = [32, 32]
    params = init_params(k_params, feature_dim, layers)

    # Case 1: lane-aligned N, B = 2.
    B, N = 2, 256
    kpts = jax.random.normal(k_kpts, (B, N, 2), jnp.float32)
    scores = jax.random.uniform(k_scores, (B, N), jnp.float32)

    out = jax.block_until_ready(keypoint_encoder_forward(kpts, scores, params))
    assert out.shape == (B, feature_dim, N)
    assert out.dtype == jnp.bfloat16

    ref_m = reference_matched(kpts, scores, params)
    assert jnp.allclose(out.astype(jnp.float32),
                        ref_m.astype(jnp.bfloat16).astype(jnp.float32),
                        atol=2e-2, rtol=2e-2), "mismatch vs matched reference"
    ref_f = reference_exact(kpts, scores, params)
    assert jnp.allclose(out.astype(jnp.float32), ref_f,
                        atol=1e-1, rtol=1e-1), "mismatch vs f32 reference"

    # Case 2: ragged N (in-kernel masked last tile, no XLA pad/slice), B = 1
    # (also exercises the >=2-grid-step rule for v7x megacore).
    B2, N2 = 1, 200
    kpts2 = jax.random.normal(k_kpts2, (B2, N2, 2), jnp.float32)
    scores2 = jax.random.uniform(k_scores2, (B2, N2), jnp.float32)

    out2 = jax.block_until_ready(
        keypoint_encoder_forward(kpts2, scores2, params))
    assert out2.shape == (B2, feature_dim, N2)
    ref2 = reference_matched(kpts2, scores2, params)
    assert jnp.allclose(out2.astype(jnp.float32),
                        ref2.astype(jnp.bfloat16).astype(jnp.float32),
                        atol=2e-2, rtol=2e-2), "ragged-N mismatch vs reference"

    print("KERNEL_OK")
</pallas_src>

<mosaic_0001>
module attributes {stable_mosaic.version = 11 : i64} {
  func.func @kernel(%arg0: i32, %arg1: i32, %arg2: memref<1x2x256xf32, #tpu.memory_space<vmem>>, %arg3: memref<1x1x256xf32, #tpu.memory_space<vmem>>, %arg4: memref<32x1xf32, #tpu.memory_space<vmem>>, %arg5: memref<32x1xf32, #tpu.memory_space<vmem>>, %arg6: memref<32x1xf32, #tpu.memory_space<vmem>>, %arg7: memref<32x1xf32, #tpu.memory_space<vmem>>, %arg8: memref<32x32xbf16, #tpu.memory_space<vmem>>, %arg9: memref<32x1xf32, #tpu.memory_space<vmem>>, %arg10: memref<32x32xbf16, #tpu.memory_space<vmem>>, %arg11: memref<32x1xf32, #tpu.memory_space<vmem>>, %arg12: memref<1x32x256xbf16, #tpu.memory_space<vmem>>) attributes {dimension_semantics = [#tpu.dimension_semantics<parallel>, #tpu.dimension_semantics<parallel>], iteration_bounds = array<i64: 2, 1>, scalar_prefetch = 0 : i64, scratch_operands = 0 : i64, tpu.core_type = #tpu.core_type<tc>, window_params = [{transform_indices = @transform_0, window_bounds = array<i64: 1, 2, 256>}, {transform_indices = @transform_1, window_bounds = array<i64: 1, 1, 256>}, {pipeline_mode = #tpu.pipeline_mode<synchronous>, transform_indices = @transform_2, window_bounds = array<i64: 32, 1>}, {pipeline_mode = #tpu.pipeline_mode<synchronous>, transform_indices = @transform_3, window_bounds = array<i64: 32, 1>}, {pipeline_mode = #tpu.pipeline_mode<synchronous>, transform_indices = @transform_4, window_bounds = array<i64: 32, 1>}, {pipeline_mode = #tpu.pipeline_mode<synchronous>, transform_indices = @transform_5, window_bounds = array<i64: 32, 1>}, {pipeline_mode = #tpu.pipeline_mode<synchronous>, transform_indices = @transform_6, window_bounds = array<i64: 32, 32>}, {pipeline_mode = #tpu.pipeline_mode<synchronous>, transform_indices = @transform_7, window_bounds = array<i64: 32, 1>}, {pipeline_mode = #tpu.pipeline_mode<synchronous>, transform_indices = @transform_8, window_bounds = array<i64: 32, 32>}, {pipeline_mode = #tpu.pipeline_mode<synchronous>, transform_indices = @transform_9, window_bounds = array<i64: 32, 1>}, {transform_indices = @transform_10, window_bounds = array<i64: 1, 32, 256>}]} {
    %c0 = arith.constant 0 : index
    %c0_0 = arith.constant 0 : index
    %c0_1 = arith.constant 0 : index
    %0 = vector.load %arg2[%c0, %c0_0, %c0_1] : memref<1x2x256xf32, #tpu.memory_space<vmem>>, vector<1x1x256xf32>
    %1 = vector.shape_cast %0 : vector<1x1x256xf32> to vector<1x256xf32>
    %c0_2 = arith.constant 0 : index
    %c1 = arith.constant 1 : index
    %c0_3 = arith.constant 0 : index
    %2 = vector.load %arg2[%c0_2, %c1, %c0_3] : memref<1x2x256xf32, #tpu.memory_space<vmem>>, vector<1x1x256xf32>
    %3 = vector.shape_cast %2 : vector<1x1x256xf32> to vector<1x256xf32>
    %c0_4 = arith.constant 0 : index
    %c0_5 = arith.constant 0 : index
    %c0_6 = arith.constant 0 : index
    %4 = vector.load %arg3[%c0_4, %c0_5, %c0_6] : memref<1x1x256xf32, #tpu.memory_space<vmem>>, vector<1x1x256xf32>
    %5 = vector.shape_cast %4 : vector<1x1x256xf32> to vector<1x256xf32>
    %c0_7 = arith.constant 0 : index
    %c0_8 = arith.constant 0 : index
    %6 = vector.load %arg4[%c0_7, %c0_8] : memref<32x1xf32, #tpu.memory_space<vmem>>, vector<32x1xf32>
    %c0_9 = arith.constant 0 : index
    %c0_10 = arith.constant 0 : index
    %7 = vector.load %arg5[%c0_9, %c0_10] : memref<32x1xf32, #tpu.memory_space<vmem>>, vector<32x1xf32>
    %c0_11 = arith.constant 0 : index
    %c0_12 = arith.constant 0 : index
    %8 = vector.load %arg6[%c0_11, %c0_12] : memref<32x1xf32, #tpu.memory_space<vmem>>, vector<32x1xf32>
    %c0_13 = arith.constant 0 : index
    %c0_14 = arith.constant 0 : index
    %9 = vector.load %arg7[%c0_13, %c0_14] : memref<32x1xf32, #tpu.memory_space<vmem>>, vector<32x1xf32>
    %10 = vector.broadcast %6 : vector<32x1xf32> to vector<32x256xf32>
    %11 = vector.broadcast %1 : vector<1x256xf32> to vector<32x256xf32>
    %12 = arith.mulf %10, %11 : vector<32x256xf32>
    %13 = vector.broadcast %7 : vector<32x1xf32> to vector<32x256xf32>
    %14 = vector.broadcast %3 : vector<1x256xf32> to vector<32x256xf32>
    %15 = arith.mulf %13, %14 : vector<32x256xf32>
    %16 = arith.addf %12, %15 : vector<32x256xf32>
    %17 = vector.broadcast %8 : vector<32x1xf32> to vector<32x256xf32>
    %18 = vector.broadcast %5 : vector<1x256xf32> to vector<32x256xf32>
    %19 = arith.mulf %17, %18 : vector<32x256xf32>
    %20 = arith.addf %16, %19 : vector<32x256xf32>
    %21 = vector.broadcast %9 : vector<32x1xf32> to vector<32x256xf32>
    %22 = arith.addf %20, %21 : vector<32x256xf32>
    %cst = arith.constant 0.000000e+00 : f32
    %23 = vector.broadcast %cst : f32 to vector<32x256xf32>
    %24 = arith.maximumf %22, %23 : vector<32x256xf32>
    %c0_15 = arith.constant 0 : index
    %c0_16 = arith.constant 0 : index
    %25 = vector.load %arg8[%c0_15, %c0_16] : memref<32x32xbf16, #tpu.memory_space<vmem>>, vector<32x32xbf16>
    %c0_17 = arith.constant 0 : index
    %c0_18 = arith.constant 0 : index
    %26 = vector.load %arg9[%c0_17, %c0_18] : memref<32x1xf32, #tpu.memory_space<vmem>>, vector<32x1xf32>
    %27 = arith.truncf %24 : vector<32x256xf32> to vector<32x256xbf16>
    %cst_19 = arith.constant dense<0.000000e+00> : vector<32x256xf32>
    %28 = tpu.matmul %25, %27, %cst_19 {dimension_numbers = #tpu.dot_dimension_numbers<[1], [0], [0], [1], [0, 0, 1, 1], [], []>} : vector<32x32xbf16>, vector<32x256xbf16>, vector<32x256xf32> -> vector<32x256xf32>
    %29 = vector.broadcast %26 : vector<32x1xf32> to vector<32x256xf32>
    %30 = arith.addf %28, %29 : vector<32x256xf32>
    %cst_20 = arith.constant 0.000000e+00 : f32
    %31 = vector.broadcast %cst_20 : f32 to vector<32x256xf32>
    %32 = arith.maximumf %30, %31 : vector<32x256xf32>
    %c0_21 = arith.constant 0 : index
    %c0_22 = arith.constant 0 : index
    %33 = vector.load %arg10[%c0_21, %c0_22] : memref<32x32xbf16, #tpu.memory_space<vmem>>, vector<32x32xbf16>
    %c0_23 = arith.constant 0 : index
    %c0_24 = arith.constant 0 : index
    %34 = vector.load %arg11[%c0_23, %c0_24] : memref<32x1xf32, #tpu.memory_space<vmem>>, vector<32x1xf32>
    %35 = arith.truncf %32 : vector<32x256xf32> to vector<32x256xbf16>
    %cst_25 = arith.constant dense<0.000000e+00> : vector<32x256xf32>
    %36 = tpu.matmul %33, %35, %cst_25 {dimension_numbers = #tpu.dot_dimension_numbers<[1], [0], [0], [1], [0, 0, 1, 1], [], []>} : vector<32x32xbf16>, vector<32x256xbf16>, vector<32x256xf32> -> vector<32x256xf32>
    %37 = vector.broadcast %34 : vector<32x1xf32> to vector<32x256xf32>
    %38 = arith.addf %36, %37 : vector<32x256xf32>
    %39 = arith.truncf %38 : vector<32x256xf32> to vector<32x256xbf16>
    %c0_26 = arith.constant 0 : index
    %c0_27 = arith.constant 0 : index
    %c0_28 = arith.constant 0 : index
    %40 = vector.load %arg12[%c0_26, %c0_27, %c0_28] : memref<1x32x256xbf16, #tpu.memory_space<vmem>>, vector<1x32x256xbf16>
    %41 = vector.shape_cast %40 : vector<1x32x256xbf16> to vector<32x256xbf16>
    %42 = vector.shape_cast %39 : vector<32x256xbf16> to vector<1x32x256xbf16>
    tpu.vector_store %arg12[%c0_26, %c0_27, %c0_28], %42 {strides = array<i32>} : memref<1x32x256xbf16, #tpu.memory_space<vmem>>, vector<1x32x256xbf16>,
    return
  }
  func.func @transform_0(%arg0: i32, %arg1: i32) -> (i32, i32, i32) {
    %c0_i32 = arith.constant 0 : i32
    %c0_i32_0 = arith.constant 0 : i32
    return %arg0, %c0_i32, %arg1 : i32, i32, i32
  }
  func.func @transform_1(%arg0: i32, %arg1: i32) -> (i32, i32, i32) {
    %c0_i32 = arith.constant 0 : i32
    %c0_i32_0 = arith.constant 0 : i32
    return %arg0, %c0_i32, %arg1 : i32, i32, i32
  }
  func.func @transform_2(%arg0: i32, %arg1: i32) -> (i32, i32) {
    %c0_i32 = arith.constant 0 : i32
    %c0_i32_0 = arith.constant 0 : i32
    %c0_i32_1 = arith.constant 0 : i32
    return %c0_i32, %c0_i32_0 : i32, i32
  }
  func.func @transform_3(%arg0: i32, %arg1: i32) -> (i32, i32) {
    %c0_i32 = arith.constant 0 : i32
    %c0_i32_0 = arith.constant 0 : i32
    %c0_i32_1 = arith.constant 0 : i32
    return %c0_i32, %c0_i32_0 : i32, i32
  }
  func.func @transform_4(%arg0: i32, %arg1: i32) -> (i32, i32) {
    %c0_i32 = arith.constant 0 : i32
    %c0_i32_0 = arith.constant 0 : i32
    %c0_i32_1 = arith.constant 0 : i32
    return %c0_i32, %c0_i32_0 : i32, i32
  }
  func.func @transform_5(%arg0: i32, %arg1: i32) -> (i32, i32) {
    %c0_i32 = arith.constant 0 : i32
    %c0_i32_0 = arith.constant 0 : i32
    %c0_i32_1 = arith.constant 0 : i32
    return %c0_i32, %c0_i32_0 : i32, i32
  }
  func.func @transform_6(%arg0: i32, %arg1: i32) -> (i32, i32) {
    %c0_i32 = arith.constant 0 : i32
    %c0_i32_0 = arith.constant 0 : i32
    %c0_i32_1 = arith.constant 0 : i32
    return %c0_i32, %c0_i32_0 : i32, i32
  }
  func.func @transform_7(%arg0: i32, %arg1: i32) -> (i32, i32) {
    %c0_i32 = arith.constant 0 : i32
    %c0_i32_0 = arith.constant 0 : i32
    %c0_i32_1 = arith.constant 0 : i32
    return %c0_i32, %c0_i32_0 : i32, i32
  }
  func.func @transform_8(%arg0: i32, %arg1: i32) -> (i32, i32) {
    %c0_i32 = arith.constant 0 : i32
    %c0_i32_0 = arith.constant 0 : i32
    %c0_i32_1 = arith.constant 0 : i32
    return %c0_i32, %c0_i32_0 : i32, i32
  }
  func.func @transform_9(%arg0: i32, %arg1: i32) -> (i32, i32) {
    %c0_i32 = arith.constant 0 : i32
    %c0_i32_0 = arith.constant 0 : i32
    %c0_i32_1 = arith.constant 0 : i32
    return %c0_i32, %c0_i32_0 : i32, i32
  }
  func.func @transform_10(%arg0: i32, %arg1: i32) -> (i32, i32, i32) {
    %c0_i32 = arith.constant 0 : i32
    %c0_i32_0 = arith.constant 0 : i32
    return %arg0, %c0_i32, %arg1 : i32, i32, i32
  }
}

</mosaic_0001>

<bundles_post_ra>
// kernel: tpu_custom_call.1
= control target key start
LH: loop header
LB: loop body
LE: loop exit
PB: predicated region body
PF: predicated region fallthrough
CT: control target
= control target key end

     0   :  { %15 = vsyncpa [#allocation3], 0  ;;  %s1413_s0 = inlined_call_operand.vmem [shape: f32[2,2,256], index: 0, kind: input, shape index: {}]   ;;  %s1414_s1 = inlined_call_operand.vmem [shape: f32[2,1,256], index: 1, kind: input, shape index: {}]   ;;  %s1415_s2 = inlined_call_operand.vmem [shape: f32[32,1], index: 2, kind: input, shape index: {}]   ;;  %s1416_s3 = inlined_call_operand.vmem [shape: f32[32,1], index: 3, kind: input, shape index: {}]   ;;  %s1417_s4 = inlined_call_operand.vmem [shape: f32[32,1], index: 4, kind: input, shape index: {}]   ;;  %s1418_s5 = inlined_call_operand.vmem [shape: f32[32,1], index: 5, kind: input, shape index: {}]   ;;  %s1419_s6 = inlined_call_operand.vmem [shape: bf16[32,32], index: 6, kind: input, shape index: {}]   ;;  %s1420_s7 = inlined_call_operand.vmem [shape: f32[32,1], index: 7, kind: input, shape index: {}]   ;;  %s1421_s8 = inlined_call_operand.vmem [shape: bf16[32,32], index: 8, kind: input, shape index: {}]   ;;  %s1422_s9 = inlined_call_operand.vmem [shape: f32[32,1], index: 9, kind: input, shape index: {}]   ;;  %s1423_s10 = inlined_call_operand.hbm [shape: bf16[2,32,256], index: 10, kind: output, shape index: {}]  }
   0x1   :  { %17 = vsyncpa [#allocation3 + $0x1], 0  ;;  %s1197_s13 = smov 0   ;;  %s1199_s14 = smov 0  }
   0x2   :  { %s1201_s15 = smov 0   ;;  %s1203_s16 = smov 0  }
   0x3   :  { %s1205_s17 = smov 0   ;;  %s1207_s18 = smov 0  }
   0x4 LB: > { %s961_s19 = sadd.s32 4294967295, %s1136_s18   ;;  %s962_s20 = sadd.s32 4294967294, %s1136_s18   ;;  %s1136_s18 = sphi %s1207_s18, %s23_s18   ;;  %s1132_s17 = sphi %s1205_s17, %s1430_s17   ;;  %s1128_s16 = sphi %s1203_s16, %s1429_s16   ;;  %s1124_s15 = sphi %s1201_s15, %s1428_s15   ;;  %s1120_s14 = sphi %s1199_s14, %s1427_s14   ;;  %s1116_s13 = sphi %s1197_s13, %s1426_s13  }
   0x5   : > { %s35_s21 = sadd.s32 1, %s1132_s17  ;;  %s268_s22 = sadd.s32 1, %s1124_s15 }
   0x6   : > { %p37_p0 = scmp.ge.s32.totalorder %s35_s21, 2  ;;  %p278_p1 = scmp.ne.s32.totalorder %s1124_s15, %s1120_s14 }
   0x7   : > { %p279_p2 = scmp.eq.s32.totalorder %s961_s19, 1  ;;  %p284_p3 = scmp.ne.s32.totalorder %s1120_s14, %s1116_s13 }
   0x8   : > { %s1432_s21 = smov (%p37_p0, %s35_s21), 0  ;;  %p285_p5 = scmp.eq.s32.totalorder %s962_s20, 1 }
   0x9   : > { %p1237_p4 = por %p279_p2, %p278_p1  ;;  %s263_s24 = ssub.s32 %s1132_s17, %s1432_s21 }
   0xa   : > { %p965_p6 = scmp.ge.s32.totalorder %s1136_s18, 1  ;;  %p266_p7 = scmp.eq.s32.totalorder %s263_s24, 0 }
   0xb   : > { %p1244_p8 = por %p285_p5, %p284_p3  ;;  %p352_p9 = scmp.lt.s32.totalorder %s1136_s18, 3 }
   0xc   : > { %s1250_s26 = scalar_select %p266_p7, %s1124_s15, %s268_s22  }
   0xd   : > { %p353_p10 = pnand %p965_p6, %p352_p9 }
   0xe   : > { %v431_v0 = vld [vmem:[%s1416_s3] sm:$0xff] (!%p353_p10)  ;;  %v1138_v2 = vmov (!%p353_p10), 0   ;;  %v432_v3 = vld [vmem:[%s1416_s3 + $0x8] sm:$0xff] (!%p353_p10)  ;;  %v430_v7 = vld [vmem:[%s1415_s2 + $0x18] sm:$0xff] (!%p353_p10)  ;;  %p403_p11 = scmp.lt.s32.totalorder (!%p353_p10), %s1128_s16, 1  ;;  %v464_v25 = vlaneseq (!%p353_p10)  ;;  %vm654_vm0 = vcmask (!%p353_p10), 261120  }
   0xf   : > { %356 = sbr.rel (%p353_p10) target bundleno = 658 (0x292), region = 60  ;;  %v427_v1 = vld [vmem:[%s1415_s2] sm:$0xff] (!%p353_p10)  ;;  %1053 = vset.pattern.permute.xlu1 (!%p353_p10), %v1138_v2  ;;  %1052 = vset.pattern.permute.xlu0 (!%p353_p10), %v1138_v2  ;;  %v428_v4 = vld [vmem:[%s1415_s2 + $0x8] sm:$0xff] (!%p353_p10)  ;;  %v429_v8 = vld [vmem:[%s1415_s2 + $0x10] sm:$0xff] (!%p353_p10)  ;;  %s399_s12 = sand.u32 (!%p353_p10), 1, %s1120_s14  }
  0x10   : > { %484 = vperm.xlu1 (!%p353_p10), %1053, %v431_v0   ;;  %445 = vperm.xlu0 (!%p353_p10), %1052, %v427_v1   ;;  %v436_v5 = vld [vmem:[%s1417_s4 + $0x8] sm:$0xff] (!%p353_p10)  ;;  %v435_v6 = vld [vmem:[%s1417_s4] sm:$0xff] (!%p353_p10)  ;;  %v434_v9 = vld [vmem:[%s1416_s3 + $0x18] sm:$0xff] (!%p353_p10)  ;;  %v465_v28 = vshrl.u32 (!%p353_p10), %v464_v25, 7  ;;  %s1139_s11 = smov (!%p353_p10), [#allocation2]  }
  0x11   : > { %693 = vmatprep.mubr.bf16.mxu0 (!%p353_p10), %v1138_v2  ;;  %802 = vmatprep.mubr.bf16.mxu1 (!%p353_p10), %v1138_v2  ;;  %v433_v10 = vld [vmem:[%s1416_s3 + $0x10] sm:$0xff] (!%p353_p10)  ;;  %v438_v11 = vld [vmem:[%s1417_s4 + $0x18] sm:$0xff] (!%p353_p10)  ;;  %v440_v13 = vld [vmem:[%s1418_s5 + $0x8] sm:$0xff] (!%p353_p10) }
  0x12   : > { %v437_v12 = vld [vmem:[%s1417_s4 + $0x10] sm:$0xff] (!%p353_p10)  ;;  %v439_v14 = vld [vmem:[%s1418_s5] sm:$0xff] (!%p353_p10)  ;;  %v442_v15 = vld [vmem:[%s1418_s5 + $0x18] sm:$0xff] (!%p353_p10)  ;;  %v466_v31 = vsub.s32 (!%p353_p10), 0, %v465_v28  ;;  %v470_v32 = vsub.s32 (!%p353_p10), 1, %v465_v28 }
  0x13   : > { %v441_v16 = vld [vmem:[%s1418_s5 + $0x10] sm:$0xff] (!%p353_p10)  ;;  %v617_v17 = vld [vmem:[%s1420_s7 + $0x8] sm:$0xff] (!%p353_p10)  ;;  %v616_v18 = vld [vmem:[%s1420_s7] sm:$0xff] (!%p353_p10) }
  0x14   : > { %489 = vperm.xlu1 (!%p353_p10), %1053, %v432_v3   ;;  %450 = vperm.xlu0 (!%p353_p10), %1052, %v428_v4   ;;  %v619_v19 = vld [vmem:[%s1420_s7 + $0x18] sm:$0xff] (!%p353_p10)  ;;  %v618_v20 = vld [vmem:[%s1420_s7 + $0x10] sm:$0xff] (!%p353_p10)  ;;  %v727_v21 = vld [vmem:[%s1422_s9 + $0x8] sm:$0xff] (!%p353_p10) }
  0x15   : > { %v726_v22 = vld [vmem:[%s1422_s9] sm:$0xff] (!%p353_p10)  ;;  %v729_v23 = vld [vmem:[%s1422_s9 + $0x18] sm:$0xff] (!%p353_p10)  ;;  %v728_v24 = vld [vmem:[%s1422_s9 + $0x10] sm:$0xff] (!%p353_p10) }
  0x16   : > { %s404_s22 = scalar_select %p403_p11, %s1128_s16, 1 }
  0x18   : > { %536 = vperm.xlu1 %1053, %v436_v5   ;;  %531 = vperm.xlu0 %1052, %v435_v6   ;;  %s988_s24 = sshll.u32 %s404_s22, 2  ;;  %s969_s30 = sshll.u32 %s404_s22, 1 }
  0x19   : > { %s410_s29 = scalar_lea.vmem %s1413_s0, %s988_s24  ;;  %s419_s19 = scalar_lea.vmem %s1414_s1, %s969_s30 }
  0x1a   : > { %v970_v33 = vld [vmem:[%s410_s29 + $0x1] ss:$2 sm:$0x3]  ;;  %v423_v34 = vld [vmem:[%s410_s29] ss:$2 sm:$0x3] }
  0x1b   : > { %v506_v37 = vrot.slane %v970_v33, %v466_v31  ;;  %v510_v38 = vrot.slane %v970_v33, %v470_v32  ;;  %v467_v39 = vrot.slane %v423_v34, %v466_v31  ;;  %v471_v40 = vrot.slane %v423_v34, %v470_v32  ;;  %v426_v41 = vld [vmem:[%s419_s19] sm:$0x3]  ;;  %s966_s19 = sshll.u32 %s399_s12, 5  ;;  %s993_s24 = sshll.u32 %s1128_s16, 9 }
  0x1c   : > { %460 = vperm.xlu1 %1053, %v430_v7   ;;  %455 = vperm.xlu0 %1052, %v429_v8   ;;  %v553_v52 = vrot.slane %v426_v41, %v466_v31  ;;  %v557_v53 = vrot.slane %v426_v41, %v470_v32  ;;  %s401_s20 = scalar_lea.vmem [#allocation2], %s966_s19  ;;  %s1363_s29 = scalar_lea.hbm %s1423_s10, %s993_s24 }
  0x1d   : > { %s867_s22 = sshll.u32 %s401_s20, 4  ;;  %s1367_s30 = scalar_lea.sflag [#allocation3], %s399_s12  ;;  %s1358_s22 = int_to_ptr.vmem [resolvable:$true] %s867_s22 }
  0x1e   : > { %s1058_s16 = scalar_lea.vmem %s1358_s22, 512  ;;  %s1062_s19 = sshll.u32 %s1139_s11, 4  ;;  %s1063_s19 = int_to_ptr.vmem [resolvable:$false] %s1062_s19 }
  0x1f   : > { %p1059_p12 = scmp.ne.s32.totalorder %s1358_s22, %s1058_s16  ;;  %s1064_s27 = scalar_lea.vmem %s1063_s19, 1024 }
  0x20   : > { %499 = vperm.xlu1 %1053, %v434_v9   ;;  %494 = vperm.xlu0 %1052, %v433_v10   ;;  %p1065_p1 = scmp.lt.s32.totalorder %s1358_s22, %s1063_s19  ;;  %p1066_p2 = scmp.lt.s32.totalorder %s1064_s27, %s1058_s16 }
  0x21   : > { %p1060_p13 = pnand %p1059_p12, %p1237_p4 }
  0x22   : > { %p1067_p3 = por %p1066_p2, %p1065_p1 }
  0x23   : > { %p1061_p0 = pneg %p1060_p13 }
  0x24   : > { %546 = vperm.xlu1 %1053, %v438_v11   ;;  %541 = vperm.xlu0 %1052, %v437_v12  }
  0x25   : > { %p1068_p5 = pnand %p1067_p3, %p1061_p0 }
  0x28   : > { %583 = vperm.xlu1 %1053, %v440_v13   ;;  %578 = vperm.xlu0 %1052, %v439_v14  }
  0x2c   : > { %593 = vperm.xlu1 %1053, %v442_v15   ;;  %588 = vperm.xlu0 %1052, %v441_v16  }
  0x30   : > { %631 = vperm.xlu1 %1053, %v617_v17   ;;  %626 = vperm.xlu0 %1052, %v616_v18  }
  0x34   : > { %641 = vperm.xlu1 %1053, %v619_v19   ;;  %636 = vperm.xlu0 %1052, %v618_v20  }
  0x38   : > { %741 = vperm.xlu1 %1053, %v727_v21   ;;  %736 = vperm.xlu0 %1052, %v726_v22  }
  0x3c   : > { %751 = vperm.xlu1 %1053, %v729_v23   ;;  %746 = vperm.xlu0 %1052, %v728_v24  }
  0x8f   : > { %v485_v26 = vpop.permute.xlu1 %484  ;;  %v446_v27 = vpop.permute.xlu0 %445 }
  0x90   : > { %v513_v44 = vmul.f32 %v506_v37, %v485_v26  ;;  %v514_v45 = vmul.f32 %v510_v38, %v485_v26  ;;  %v474_v46 = vmul.f32 %v467_v39, %v446_v27  ;;  %v475_v47 = vmul.f32 %v471_v40, %v446_v27 }
  0x92   : > { %v521_v56 = vadd.f32 %v513_v44, %v474_v46  ;;  %v522_v57 = vadd.f32 %v514_v45, %v475_v47 }
  0x93   : > { %v490_v29 = vpop.permute.xlu1 %489  ;;  %v451_v30 = vpop.permute.xlu0 %450 }
  0x94   : > { %v515_v48 = vmul.f32 %v506_v37, %v490_v29  ;;  %v516_v49 = vmul.f32 %v510_v38, %v490_v29  ;;  %v476_v50 = vmul.f32 %v467_v39, %v451_v30  ;;  %v477_v51 = vmul.f32 %v471_v40, %v451_v30 }
  0x96   : > { %v523_v58 = vadd.f32 %v515_v48, %v476_v50  ;;  %v524_v59 = vadd.f32 %v516_v49, %v477_v51  ;;  %v1054_v51 = vld [vmem:[%s1419_s6] sm:$0xff]  }
  0x97   : > { %v537_v35 = vpop.permute.xlu1 %536  ;;  %v532_v36 = vpop.permute.xlu0 %531 }
  0x98   : > { %v562_v60 = vmul.f32 %v553_v52, %v537_v35  ;;  %v563_v61 = vmul.f32 %v557_v53, %v537_v35  ;;  %v560_v62 = vmul.f32 %v553_v52, %v532_v36  ;;  %v561_v63 = vmul.f32 %v557_v53, %v532_v36 }
  0x9a   : > { %v570_v15 = vadd.f32 %v562_v60, %v523_v58  ;;  %v571_v16 = vadd.f32 %v563_v61, %v524_v59  ;;  %v568_v17 = vadd.f32 %v560_v62, %v521_v56  ;;  %v569_v18 = vadd.f32 %v561_v63, %v522_v57 }
  0x9b   : > { %v461_v42 = vpop.permute.xlu1 %460  ;;  %v456_v43 = vpop.permute.xlu0 %455 }
  0x9c   : > { %v480_v7 = vmul.f32 %v467_v39, %v461_v42  ;;  %v481_v8 = vmul.f32 %v471_v40, %v461_v42  ;;  %v478_v9 = vmul.f32 %v467_v39, %v456_v43  ;;  %v479_v10 = vmul.f32 %v471_v40, %v456_v43 }
  0x9f   : > { %v500_v54 = vpop.permute.xlu1 %499  ;;  %v495_v55 = vpop.permute.xlu0 %494 }
  0xa0   : > { %v519_v0 = vmul.f32 %v506_v37, %v500_v54  ;;  %v520_v1 = vmul.f32 %v510_v38, %v500_v54  ;;  %v517_v3 = vmul.f32 %v506_v37, %v495_v55  ;;  %v518_v4 = vmul.f32 %v510_v38, %v495_v55 }
  0xa2   : > { %v527_v19 = vadd.f32 %v519_v0, %v480_v7  ;;  %v528_v20 = vadd.f32 %v520_v1, %v481_v8  ;;  %v525_v21 = vadd.f32 %v517_v3, %v478_v9  ;;  %v526_v22 = vadd.f32 %v518_v4, %v479_v10 }
  0xa3   : > { %v547_v5 = vpop.permute.xlu1 %546  ;;  %v542_v6 = vpop.permute.xlu0 %541 }
  0xa4   : > { %v566_v11 = vmul.f32 %v553_v52, %v547_v5  ;;  %v567_v12 = vmul.f32 %v557_v53, %v547_v5  ;;  %v564_v13 = vmul.f32 %v553_v52, %v542_v6  ;;  %v565_v14 = vmul.f32 %v557_v53, %v542_v6  ;;  %v1055_v52 = vld [vmem:[%s1419_s6 + $0x8] sm:$0xff]  }
  0xa6   : > { %v574_v29 = vadd.f32 %v566_v11, %v527_v19  ;;  %v575_v30 = vadd.f32 %v567_v12, %v528_v20  ;;  %v572_v31 = vadd.f32 %v564_v13, %v525_v21  ;;  %v573_v32 = vadd.f32 %v565_v14, %v526_v22  ;;  %v1056_v22 = vld [vmem:[%s1421_s8] sm:$0xff]  }
  0xa7   : > { %v584_v23 = vpop.permute.xlu1 %583  ;;  %v579_v24 = vpop.permute.xlu0 %578 }
  0xa8   : > { %v598_v25 = vadd.f32 %v584_v23, %v570_v15  ;;  %v599_v26 = vadd.f32 %v584_v23, %v571_v16  ;;  %v596_v27 = vadd.f32 %v579_v24, %v568_v17  ;;  %v597_v28 = vadd.f32 %v579_v24, %v569_v18  ;;  %v1057_v23 = vld [vmem:[%s1421_s8 + $0x8] sm:$0xff]  }
  0xaa   : > { %v606_v33 = vmax.f32 %v598_v25, 0.0  ;;  %v604_v34 = vmax.f32 %v596_v27, 0.0  ;;  %v605_v35 = vmax.f32 %v597_v28, 0.0  ;;  %v607_v36 = vmax.f32 %v599_v26, 0.0 }
  0xab   : > { %v594_v37 = vpop.permute.xlu1 %593  ;;  %v589_v38 = vpop.permute.xlu0 %588 }
  0xac   : > { %v602_v39 = vadd.f32 %v594_v37, %v574_v29  ;;  %v603_v40 = vadd.f32 %v594_v37, %v575_v30  ;;  %v600_v41 = vadd.f32 %v589_v38, %v572_v31  ;;  %v601_v42 = vadd.f32 %v589_v38, %v573_v32 }
  0xad   : > { %v621_v43 = vpack.c.bf16 %v607_v36, %v605_v35  ;;  %v620_v44 = vpack.c.bf16 %v606_v33, %v604_v34 }
  0xae   : > { %v610_v45 = vmax.f32 %v602_v39, 0.0  ;;  %v611_v46 = vmax.f32 %v603_v40, 0.0  ;;  %v608_v47 = vmax.f32 %v600_v41, 0.0  ;;  %v609_v48 = vmax.f32 %v601_v42, 0.0 }
  0xaf   : > { %661 = vmatprep.subr.bf16.mxu0 %v621_v43  ;;  %v627_v53 = vpop.permute.xlu0 %626  ;;  %v632_v57 = vpop.permute.xlu1 %631 }
  0xb0   : > { %662 = vmatpush1.bf16.msra.mxu0 %v620_v44  ;;  %v623_v49 = vpack.c.bf16 %v611_v46, %v609_v48  ;;  %v622_v50 = vpack.c.bf16 %v610_v45, %v608_v47 }
  0xb2   : > { %663 = vmatprep.subr.bf16.mxu0 %v623_v49 }
  0xb3   : > { %v637_v5 = vpop.permute.xlu0 %636  ;;  %v642_v10 = vpop.permute.xlu1 %641 }
  0xb4   : > { %664 = vmatpush1.bf16.msra.mxu0 %v622_v50 }
  0xb7   : > { %973 = vmatmul.mubr.msk.bf16.vlgmr.msra.gmra.mrb[0].mxu0 %vm654_vm0, %v1054_v51  ;;  %v737_v24 = vpop.permute.xlu0 %736  ;;  %v742_v28 = vpop.permute.xlu1 %741 }
  0xb8   : > { %703 = vmatprep.mubr.bf16.mxu0 %v1138_v2 }
  0xbb   : > { %v747_v35 = vpop.permute.xlu0 %746  ;;  %v752_v39 = vpop.permute.xlu1 %751 }
  0xbf   : > { %974 = vmatmul.mubr.msk.bf16.gmra.mrb[4].mxu0 %vm654_vm0, %v1055_v52 }
 0x18a   : > { %v695_v54 = vpop.f32.mrb[0].mxu0 }
 0x18b   : > { %v696_v55 = vadd.f32 %v695_v54, %v627_v53  ;;  %v697_v56 = vpop.f32.mrb[1].mxu0 }
 0x18c   : > { %v698_v58 = vadd.f32 %v697_v56, %v627_v53  ;;  %v699_v59 = vpop.f32.mrb[2].mxu0 }
 0x18d   : > { %v700_v60 = vadd.f32 %v699_v59, %v632_v57  ;;  %v701_v61 = vpop.f32.mrb[3].mxu0  ;;  %v714_v63 = vmax.f32 %v696_v55, 0.0 }
 0x18e   : > { %v702_v62 = vadd.f32 %v701_v61, %v632_v57  ;;  %v715_v1 = vmax.f32 %v698_v58, 0.0 }
 0x18f   : > { %v716_v0 = vmax.f32 %v700_v60, 0.0 }
 0x190   : > { %v717_v3 = vmax.f32 %v702_v62, 0.0 }
 0x191   : > { %v730_v4 = vpack.c.bf16 %v716_v0, %v714_v63 }
 0x192   : > { %v705_v6 = vpop.f32.mrb[4].mxu0  ;;  %v731_v7 = vpack.c.bf16 %v717_v3, %v715_v1 }
 0x193   : > { %v706_v8 = vadd.f32 %v705_v6, %v637_v5  ;;  %v707_v9 = vpop.f32.mrb[5].mxu0 }
 0x194   : > { %v708_v11 = vadd.f32 %v707_v9, %v637_v5  ;;  %v709_v12 = vpop.f32.mrb[6].mxu0  ;;  %770 = vmatprep.subr.bf16.mxu1 %v731_v7 }
 0x195   : > { %v710_v13 = vadd.f32 %v709_v12, %v642_v10  ;;  %v711_v14 = vpop.f32.mrb[7].mxu0  ;;  %771 = vmatpush1.bf16.msra.mxu1 %v730_v4  ;;  %v718_v16 = vmax.f32 %v706_v8, 0.0 }
 0x196   : > { %v712_v15 = vadd.f32 %v711_v14, %v642_v10  ;;  %v719_v18 = vmax.f32 %v708_v11, 0.0 }
 0x197   : > { %v720_v17 = vmax.f32 %v710_v13, 0.0 }
 0x198   : > { %v721_v19 = vmax.f32 %v712_v15, 0.0 }
 0x199   : > { %v732_v20 = vpack.c.bf16 %v720_v17, %v718_v16 }
 0x19a   : > { %v733_v21 = vpack.c.bf16 %v721_v19, %v719_v18 }
 0x19c   : > { %772 = vmatprep.subr.bf16.mxu1 %v733_v21 }
 0x19d   : > { %773 = vmatpush1.bf16.msra.mxu1 %v732_v20 }
 0x1a0   : > { %977 = vmatmul.mubr.msk.bf16.vlgmr.msra.gmra.mrb[0].mxu1 %vm654_vm0, %v1056_v22 }
 0x1a1   : > { %812 = vmatprep.mubr.bf16.mxu1 %v1138_v2 }
 0x1a8   : > { %978 = vmatmul.mubr.msk.bf16.gmra.mrb[4].mxu1 %vm654_vm0, %v1057_v23 }
 0x273   : > { %v804_v25 = vpop.f32.mrb[0].mxu1 }
 0x274   : > { %v805_v26 = vadd.f32 %v804_v25, %v737_v24  ;;  %v806_v27 = vpop.f32.mrb[1].mxu1 }
 0x275   : > { %v807_v29 = vadd.f32 %v806_v27, %v737_v24  ;;  %v808_v30 = vpop.f32.mrb[2].mxu1 }
 0x276   : > { %v809_v31 = vadd.f32 %v808_v30, %v742_v28  ;;  %v810_v32 = vpop.f32.mrb[3].mxu1 }
 0x277   : > { %v989_v2 = vpack.c.bf16 %v807_v29, %v805_v26  ;;  %v811_v33 = vadd.f32 %v810_v32, %v742_v28 }
 0x279   : > { %847 = vst [vmem:[%s401_s20] sm:$0xff] %v989_v2  ;;  %v990_v34 = vpack.c.bf16 %v811_v33, %v809_v31 }
 0x27b   : > { %848 = vst [vmem:[%s401_s20 + $0x8] sm:$0xff] %v990_v34  ;;  %v814_v36 = vpop.f32.mrb[4].mxu1 }
 0x27c   : > { %v815_v37 = vadd.f32 %v814_v36, %v747_v35  ;;  %v816_v38 = vpop.f32.mrb[5].mxu1 }
 0x27d   : > { %v817_v40 = vadd.f32 %v816_v38, %v747_v35  ;;  %v818_v41 = vpop.f32.mrb[6].mxu1 }
 0x27e   : > { %v819_v42 = vadd.f32 %v818_v41, %v752_v39  ;;  %v820_v43 = vpop.f32.mrb[7].mxu1 }
 0x27f   : > { %v991_v44 = vpack.c.bf16 %v817_v40, %v815_v37  ;;  %v821_v45 = vadd.f32 %v820_v43, %v752_v39 }
 0x281   : > { %849 = vst [vmem:[%s401_s20 + $0x10] sm:$0xff] %v991_v44  ;;  %v992_v46 = vpack.c.bf16 %v821_v45, %v819_v42 }
 0x283   : > { %850 = vst [vmem:[%s401_s20 + $0x18] sm:$0xff] %v992_v46 }
 0x284   : > { %1071 = shalt.err (!%p1068_p5)
}
 0x285   : > { %s1072_s12 = scalar_lea.hbm %s1363_s29, 512  ;;  %s1076_s28 = scalar_lea.hbm %s1423_s10, 1024 }
 0x286   : > { %p1073_p6 = scmp.ne.s32.totalorder %s1363_s29, %s1072_s12  ;;  %p1077_p10 = scmp.lt.u32.totalorder %s1363_s29, %s1423_s10 }
 0x287   : > { %p1078_p11 = scmp.lt.u32.totalorder %s1076_s28, %s1072_s12  ;;  %p1080_p13 = scmp.lt.u32.totalorder %s1072_s12, %s1363_s29 }
 0x288   : > { %p1074_p7 = pnand %p1073_p6, %p1237_p4 }
 0x289   : > { %p1079_p12 = por %p1078_p11, %p1077_p10 }
 0x28a   : > { %p1075_p9 = pneg %p1074_p7 }
 0x28b   : > { %p1081_p0 = por %p1080_p13, %p1079_p12 }
 0x28d   : > { %p1082_p1 = pnand %p1081_p0, %p1075_p9 }
 0x28f   : > { %1085 = shalt.err (!%p1082_p1)
}
 0x290   : > { %s1140_s16 = smov 128   ;;  %s1141_s27 = smov 8  }
 0x291   : > { %994 = dma.vmem_to_hbm [thread:$0]  (%p1237_p4), %s1358_s22, 512, %s1363_s29, %s1367_s30, %s1140_s16, %s1140_s16, %s1141_s27  }
 0x292 PF: > { %p1000_p2 = scmp.ge.s32.totalorder %s1136_s18, 2  ;;  %s882_s20 = sand.u32 1, %s1116_s13  }
 0x293   : > { %s883_s12 = scalar_lea.sflag [#allocation3], %s882_s20 }
 0x294   : > { %p997_p3 = pnand %p1000_p2, %p1244_p8 }
 0x296   : > { %1111 = dma.done.wait (!%p997_p3), %s883_s12, 512  }
 0x297   : > { %1113 = vsyncadd (!%p997_p3), %s883_s12, 4294966784  ;;  %s23_s18 = sadd.s32 1, %s1136_s18   ;;  %s1426_s13 = smov %s1120_s14 }
 0x298   : > { %p20_p5 = scmp.ge.s32.totalorder %s23_s18, 4   ;;  %s1427_s14 = smov %s1124_s15 }
 0x299   : > { %s1428_s15 = smov %s1250_s26  ;;  %s1429_s16 = smov %s1132_s17 }
 0x29a   : > { %s1430_s17 = smov %s1432_s21  ;;  %22 = sbr.rel (!%p20_p5) target bundleno = 4 (0x4), region = 99 }
 0x2a1   :  { %888 = vsyncpa [#allocation3], 1 }
 0x2a2   :  { %890 = vsyncpa [#allocation3 + $0x1], 1 }

</bundles_post_ra>
